<compile_context>
chip_gen: v7x
topology: tpu7x:2x2x1
jax: 0.10.0
libtpu: 0.0.40
codegen_flags: <defaults>
</compile_context>

<pallas_src>
import jax
import jax.numpy as jnp
from jax.experimental import pallas as pl
from jax.experimental.pallas import tpu as pltpu

HIDDEN = 32  # fixed by the module: nn.Linear(d_model, 32)


def _round_up(n, m):
    return ((n + m - 1) // m) * m


def _vmem_tile_bytes(rows, cols, itemsize):
    # VMEM tiles are (8, 128)-padded.
    return _round_up(max(rows, 1), 8) * _round_up(max(cols, 1), 128) * itemsize


def mlp_kernel(x_ref, w1_ref, b1_ref, w2_ref, b2_ref, o_ref):
    # Hidden layer: x @ W1 + b1, ReLU  (MXU matmul w/ f32 accumulation; VPU add/max).
    h = jnp.dot(x_ref[...], w1_ref[...], preferred_element_type=jnp.float32)
    h = jnp.maximum(h + b1_ref[...], 0.0)          # b1 is (1, hidden), broadcasts
    # Output layer: h @ W2 + b2.  Cast h to W2's dtype so bf16 weights use the
    # bf16 MXU path; with f32 weights this is a no-op.
    out = jnp.dot(h.astype(w2_ref.dtype), w2_ref[...],
                  preferred_element_type=jnp.float32)
    o_ref[...] = (out + b2_ref[...]).astype(o_ref.dtype)


def _pick_tm(rows, d_model, num_classes, x_itemsize, out_itemsize,
             budget_bytes=10 << 20):
    """Rows per tile: as large as a ~10 MiB double-buffered activation budget
    allows, but with >= 2 grid steps so v7x's two TensorCores both get work."""
    if rows <= 8:
        return max(rows, 1)                        # single full-dim block
    per_row = (2 * _round_up(d_model, 128) * x_itemsize          # x, double-buffered
               + 2 * _round_up(num_classes, 128) * out_itemsize  # out, double-buffered
               + _round_up(HIDDEN, 128) * 4)                     # f32 hidden temp
    tm = max(8, (budget_bytes // per_row) // 8 * 8)
    tm = min(tm, 8192)
    # Keep at least 2 grid steps (lets v7x split the "parallel" row axis).
    tm = min(tm, _round_up(pl.cdiv(rows, 2), 8))
    return tm


def classification_decoder_forward(x, w1, b1, w2, b2, *, compute_dtype=None, tm=None):
    """x: [..., d_model] -> [..., num_classes]

    w1: [d_model, 32], b1: [32], w2: [32, num_classes], b2: [num_classes]
    (PyTorch stores Linear weights as [out, in]; transpose when importing.)
    compute_dtype: optionally jnp.bfloat16 to halve the x/W HBM traffic; f32
    accumulation and f32 bias/ReLU are kept, output stays in x.dtype.
    """
    lead_shape = x.shape[:-1]
    d_model = x.shape[-1]
    hidden = w1.shape[1]
    num_classes = w2.shape[1]
    out_dtype = x.dtype

    x2d = x.reshape(-1, d_model)
    if compute_dtype is not None:
        x2d = x2d.astype(compute_dtype)
        w1 = w1.astype(compute_dtype)
        w2 = w2.astype(compute_dtype)
    b1_2d = b1.astype(jnp.float32).reshape(1, hidden)
    b2_2d = b2.astype(jnp.float32).reshape(1, num_classes)

    rows = x2d.shape[0]
    x_bytes = jnp.dtype(x2d.dtype).itemsize
    w_bytes_per = jnp.dtype(w1.dtype).itemsize
    o_bytes = jnp.dtype(out_dtype).itemsize

    if tm is None:
        tm = _pick_tm(rows, d_model, num_classes, x_bytes, o_bytes)
    else:
        tm = min(tm, rows)
        if tm < rows:                      # partial tiles must be (…,8,·)-aligned
            tm = max(8, tm // 8 * 8)
    grid = (pl.cdiv(rows, tm),)

    # Explicit VMEM budget (double-buffered blocks + hidden temp) with headroom,
    # so double-buffering survives v5e's 16 MiB scoped default and v7x's 64 MiB.
    needed = (2 * (_vmem_tile_bytes(tm, d_model, x_bytes)
                   + _vmem_tile_bytes(tm, num_classes, o_bytes))
              + 2 * (_vmem_tile_bytes(d_model, hidden, w_bytes_per)
                     + _vmem_tile_bytes(1, hidden, 4)
                     + _vmem_tile_bytes(hidden, num_classes, w_bytes_per)
                     + _vmem_tile_bytes(1, num_classes, 4))
              + _vmem_tile_bytes(tm, hidden, 4))
    vmem_limit = int(min(48 << 20, max(32 << 20, needed + (4 << 20))))

    flops = 2 * rows * (d_model * hidden + hidden * num_classes)
    bytes_accessed = (rows * d_model * x_bytes
                      + rows * num_classes * o_bytes
                      + d_model * hidden * w_bytes_per + hidden * 4
                      + hidden * num_classes * w_bytes_per + num_classes * 4)

    out2d = pl.pallas_call(
        mlp_kernel,
        out_shape=jax.ShapeDtypeStruct((rows, num_classes), out_dtype),
        grid_spec=pl.GridSpec(
            grid=grid,
            in_specs=[
                # activations: stream row tiles (double-buffered by Pallas)
                pl.BlockSpec((tm, d_model), lambda i: (i, 0)),
                # tiny weights/biases: constant index -> stay VMEM-resident
                pl.BlockSpec((d_model, hidden), lambda i: (0, 0)),
                pl.BlockSpec((1, hidden), lambda i: (0, 0)),
                pl.BlockSpec((hidden, num_classes), lambda i: (0, 0)),
                pl.BlockSpec((1, num_classes), lambda i: (0, 0)),
            ],
            out_specs=pl.BlockSpec((tm, num_classes), lambda i: (i, 0)),
        ),
        compiler_params=pltpu.CompilerParams(
            # Row tiles are independent -> parallel (lets v7x split across 2 TCs).
            dimension_semantics=("parallel",),
            vmem_limit_bytes=vmem_limit,
        ),
        cost_estimate=pl.CostEstimate(
            flops=flops, transcendentals=0, bytes_accessed=bytes_accessed),
    )(x2d, w1, b1_2d, w2, b2_2d)

    return out2d.reshape(*lead_shape, num_classes)


if __name__ == "__main__":
    # Small shapes consistent with the module: batch=2, seq=8, d_model=32.
    d_model = 32
    hidden = 32          # fixed by the module: Linear(d_model, 32)
    num_classes = 10
    batch, seq = 2, 8

    key = jax.random.PRNGKey(0)
    kx, kw1, kb1, kw2, kb2 = jax.random.split(key, 5)

    x = jax.random.normal(kx, (batch, seq, d_model), dtype=jnp.float32)

    # Parameters generated directly in [in, out] layout for the kernel
    # (PyTorch stores Linear weight as [out, in]; transpose when importing).
    w1 = jax.random.normal(kw1, (d_model, hidden), dtype=jnp.float32) * 0.1
    b1 = jax.random.normal(kb1, (hidden,), dtype=jnp.float32) * 0.1
    w2 = jax.random.normal(kw2, (hidden, num_classes), dtype=jnp.float32) * 0.1
    b2 = jax.random.normal(kb2, (num_classes,), dtype=jnp.float32) * 0.1

    def ref_fn(xx):
        r = jnp.maximum(xx.reshape(-1, d_model) @ w1 + b1, 0.0) @ w2 + b2
        return r.reshape(*xx.shape[:-1], num_classes)

    # 1) f32 path at the module-sized input.
    out = jax.block_until_ready(classification_decoder_forward(x, w1, b1, w2, b2))
    assert out.shape == (batch, seq, num_classes)
    assert jnp.allclose(out, ref_fn(x), atol=1e-5, rtol=1e-5)

    # 2) Ragged row count -> exercises the partial (clipped) last block,
    #    i.e. the no-padding path.
    x_rag = jax.random.normal(kx, (3, 7, d_model), dtype=jnp.float32)
    out_rag = jax.block_until_ready(
        classification_decoder_forward(x_rag, w1, b1, w2, b2))
    assert out_rag.shape == (3, 7, num_classes)
    assert jnp.allclose(out_rag, ref_fn(x_rag), atol=1e-5, rtol=1e-5)

    # 3) Optional bf16-input path (halved HBM read of x/W, f32 accumulation).
    out_bf16 = jax.block_until_ready(
        classification_decoder_forward(x, w1, b1, w2, b2,
                                       compute_dtype=jnp.bfloat16))
    assert jnp.allclose(out_bf16, ref_fn(x), atol=0.1, rtol=0.1)

    print("KERNEL_OK")
</pallas_src>

<mosaic_0001>
module attributes {stable_mosaic.version = 11 : i64} {
  func.func @mlp_kernel(%arg0: i32, %arg1: memref<8x32xf32, #tpu.memory_space<vmem>>, %arg2: memref<32x32xf32, #tpu.memory_space<vmem>>, %arg3: memref<1x32xf32, #tpu.memory_space<vmem>>, %arg4: memref<32x10xf32, #tpu.memory_space<vmem>>, %arg5: memref<1x10xf32, #tpu.memory_space<vmem>>, %arg6: memref<8x10xf32, #tpu.memory_space<vmem>>) attributes {dimension_semantics = [#tpu.dimension_semantics<parallel>], iteration_bounds = array<i64: 2>, scalar_prefetch = 0 : i64, scratch_operands = 0 : i64, tpu.core_type = #tpu.core_type<tc>, window_params = [{transform_indices = @transform_0, window_bounds = array<i64: 8, 32>}, {pipeline_mode = #tpu.pipeline_mode<synchronous>, transform_indices = @transform_1, window_bounds = array<i64: 32, 32>}, {pipeline_mode = #tpu.pipeline_mode<synchronous>, transform_indices = @transform_2, window_bounds = array<i64: 1, 32>}, {pipeline_mode = #tpu.pipeline_mode<synchronous>, transform_indices = @transform_3, window_bounds = array<i64: 32, 10>}, {pipeline_mode = #tpu.pipeline_mode<synchronous>, transform_indices = @transform_4, window_bounds = array<i64: 1, 10>}, {transform_indices = @transform_5, window_bounds = array<i64: 8, 10>}]} {
    %c0 = arith.constant 0 : index
    %c0_0 = arith.constant 0 : index
    %0 = vector.load %arg1[%c0, %c0_0] : memref<8x32xf32, #tpu.memory_space<vmem>>, vector<8x32xf32>
    %c0_1 = arith.constant 0 : index
    %c0_2 = arith.constant 0 : index
    %1 = vector.load %arg2[%c0_1, %c0_2] : memref<32x32xf32, #tpu.memory_space<vmem>>, vector<32x32xf32>
    %cst = arith.constant dense<0.000000e+00> : vector<8x32xf32>
    %2 = tpu.matmul %0, %1, %cst {dimension_numbers = #tpu.dot_dimension_numbers<[1], [0], [0], [1], [0, 0, 1, 1], [], []>} : vector<8x32xf32>, vector<32x32xf32>, vector<8x32xf32> -> vector<8x32xf32>
    %c0_3 = arith.constant 0 : index
    %c0_4 = arith.constant 0 : index
    %3 = vector.load %arg3[%c0_3, %c0_4] : memref<1x32xf32, #tpu.memory_space<vmem>>, vector<1x32xf32>
    %4 = vector.broadcast %3 : vector<1x32xf32> to vector<8x32xf32>
    %5 = arith.addf %2, %4 : vector<8x32xf32>
    %cst_5 = arith.constant 0.000000e+00 : f32
    %6 = vector.broadcast %cst_5 : f32 to vector<8x32xf32>
    %7 = arith.maximumf %5, %6 : vector<8x32xf32>
    %c0_6 = arith.constant 0 : index
    %c0_7 = arith.constant 0 : index
    %8 = vector.load %arg4[%c0_6, %c0_7] : memref<32x10xf32, #tpu.memory_space<vmem>>, vector<32x10xf32>
    %cst_8 = arith.constant dense<0.000000e+00> : vector<8x10xf32>
    %9 = tpu.matmul %7, %8, %cst_8 {dimension_numbers = #tpu.dot_dimension_numbers<[1], [0], [0], [1], [0, 0, 1, 1], [], []>} : vector<8x32xf32>, vector<32x10xf32>, vector<8x10xf32> -> vector<8x10xf32>
    %c0_9 = arith.constant 0 : index
    %c0_10 = arith.constant 0 : index
    %10 = vector.load %arg5[%c0_9, %c0_10] : memref<1x10xf32, #tpu.memory_space<vmem>>, vector<1x10xf32>
    %11 = vector.broadcast %10 : vector<1x10xf32> to vector<8x10xf32>
    %12 = arith.addf %9, %11 : vector<8x10xf32>
    %c0_11 = arith.constant 0 : index
    %c0_12 = arith.constant 0 : index
    %13 = vector.load %arg6[%c0_11, %c0_12] : memref<8x10xf32, #tpu.memory_space<vmem>>, vector<8x10xf32>
    tpu.vector_store %arg6[%c0_11, %c0_12], %12 {strides = array<i32>} : memref<8x10xf32, #tpu.memory_space<vmem>>, vector<8x10xf32>,
    return
  }
  func.func @transform_0(%arg0: i32) -> (i32, i32) {
    %c0_i32 = arith.constant 0 : i32
    %c0_i32_0 = arith.constant 0 : i32
    return %arg0, %c0_i32 : i32, i32
  }
  func.func @transform_1(%arg0: i32) -> (i32, i32) {
    %c0_i32 = arith.constant 0 : i32
    %c0_i32_0 = arith.constant 0 : i32
    %c0_i32_1 = arith.constant 0 : i32
    return %c0_i32, %c0_i32_0 : i32, i32
  }
  func.func @transform_2(%arg0: i32) -> (i32, i32) {
    %c0_i32 = arith.constant 0 : i32
    %c0_i32_0 = arith.constant 0 : i32
    %c0_i32_1 = arith.constant 0 : i32
    return %c0_i32, %c0_i32_0 : i32, i32
  }
  func.func @transform_3(%arg0: i32) -> (i32, i32) {
    %c0_i32 = arith.constant 0 : i32
    %c0_i32_0 = arith.constant 0 : i32
    %c0_i32_1 = arith.constant 0 : i32
    return %c0_i32, %c0_i32_0 : i32, i32
  }
  func.func @transform_4(%arg0: i32) -> (i32, i32) {
    %c0_i32 = arith.constant 0 : i32
    %c0_i32_0 = arith.constant 0 : i32
    %c0_i32_1 = arith.constant 0 : i32
    return %c0_i32, %c0_i32_0 : i32, i32
  }
  func.func @transform_5(%arg0: i32) -> (i32, i32) {
    %c0_i32 = arith.constant 0 : i32
    %c0_i32_0 = arith.constant 0 : i32
    return %arg0, %c0_i32 : i32, i32
  }
}

</mosaic_0001>

<bundles_post_ra>
// kernel: tpu_custom_call.1
= control target key start
LH: loop header
LB: loop body
LE: loop exit
PB: predicated region body
PF: predicated region fallthrough
CT: control target
= control target key end

     0   :  { %10 = vsyncpa [#allocation3], 0  ;;  %s794_s0 = inlined_call_operand.vmem [shape: f32[16,32], index: 0, kind: input, shape index: {}]   ;;  %s795_s1 = inlined_call_operand.vmem [shape: f32[32,32], index: 1, kind: input, shape index: {}]   ;;  %s796_s2 = inlined_call_operand.vmem [shape: f32[1,32], index: 2, kind: input, shape index: {}]   ;;  %s797_s3 = inlined_call_operand.vmem [shape: f32[32,10], index: 3, kind: input, shape index: {}]   ;;  %s798_s4 = inlined_call_operand.vmem [shape: f32[1,10], index: 4, kind: input, shape index: {}]   ;;  %s799_s5 = inlined_call_operand.hbm [shape: f32[16,10], index: 5, kind: output, shape index: {}]  }
   0x1   :  { %12 = vsyncpa [#allocation3 + $0x1], 0  ;;  %s664_s18 = smov 0   ;;  %s666_s19 = smov 0  }
   0x2   :  { %s668_s20 = smov 0   ;;  %s670_s21 = smov 0  }
   0x3 LB: > { %s685_s22 = sadd.s32 4294967295, %s628_s21   ;;  %s466_s23 = sadd.s32 4294967294, %s628_s21   ;;  %s628_s21 = sphi %s670_s21, %s805_s21   ;;  %s624_s20 = sphi %s668_s20, %s804_s20   ;;  %s620_s19 = sphi %s666_s19, %s803_s19   ;;  %s616_s18 = sphi %s664_s18, %s802_s18  }
   0x4   : > { %s689_s24 = sadd.s32 1, %s628_s21   ;;  %s135_s25 = sadd.s32 1, %s624_s20 }
   0x5   : > { %s132_s26 = ssub.s32 %s628_s21, %s689_s24  ;;  %p145_p0 = scmp.ne.s32.totalorder %s624_s20, %s620_s19 }
   0x6   : > { %p133_p1 = scmp.eq.s32.totalorder %s132_s26, 0  ;;  %p146_p2 = scmp.eq.s32.totalorder %s685_s22, 1 }
   0x7   : > { %p151_p3 = scmp.ne.s32.totalorder %s620_s19, %s616_s18  ;;  %p152_p4 = scmp.eq.s32.totalorder %s466_s23, 1 }
   0x8   : > { %s700_s27 = scalar_select %p133_p1, %s624_s20, %s135_s25  }
   0x9   : > { %p702_p5 = por %p146_p2, %p145_p0  ;;  %p706_p6 = por %p152_p4, %p151_p3 }
   0xa   : > { %p469_p7 = scmp.ge.s32.totalorder %s628_s21, 1  ;;  %p189_p8 = scmp.lt.s32.totalorder %s628_s21, 3 }
   0xc   : > { %p190_p9 = pnand %p469_p7, %p189_p8 }
   0xd   : > { %v221_v0 = vld [vmem:[%s795_s1] sm:$0xff] (!%p190_p9)  ;;  %v222_v1 = vld [vmem:[%s795_s1 + $0x8] sm:$0xff] (!%p190_p9)  ;;  %v223_v2 = vld [vmem:[%s795_s1 + $0x10] sm:$0xff] (!%p190_p9)  ;;  %v630_v3 = vmov (!%p190_p9), 0.0|0.0   ;;  %vm631_vm0 = vmmov (!%p190_p9), 0   ;;  %v632_v6 = vmov (!%p190_p9), 0.0  }
   0xe   : > { %193 = sbr.rel (%p190_p9) target bundleno = 470 (0x1d6), region = 40  ;;  %512 = vmatprep.subr.bf16.mxu0 (!%p190_p9), %v630_v3  ;;  %v513_v4 = vpack.c.bf16 (!%p190_p9), %v222_v1, %v221_v0  ;;  %v224_v5 = vld [vmem:[%s795_s1 + $0x18] sm:$0xff] (!%p190_p9)  ;;  %498 = vmatprep.mubr.msk.f32.mxu0 (!%p190_p9), %vm631_vm0, %v632_v6  ;;  %p216_p10 = scmp.lt.s32.totalorder (!%p190_p9), %s685_s22, 1  ;;  %v307_v7 = vld [vmem:[%s797_s3] sm:$0xff] (!%p190_p9)  ;;  %v308_v8 = vld [vmem:[%s797_s3 + $0x8] sm:$0xff] (!%p190_p9)  ;;  %vm232_vm1 = vcmask (!%p190_p9), 261120  }
   0xf   : > { %518 = vmatprep.subr.bf16.mxu1 (!%p190_p9), %v630_v3  ;;  %v519_v9 = vpack.c.bf16 (!%p190_p9), %v308_v8, %v307_v7  ;;  %509 = vmatprep.mubr.msk.f32.mxu1 (!%p190_p9), %vm631_vm0, %v632_v6  ;;  %v516_v10 = vpack.c.bf16 (!%p190_p9), %v224_v5, %v223_v2  ;;  %v309_v12 = vld [vmem:[%s797_s3 + $0x10] sm:$0xff] (!%p190_p9)  ;;  %v310_v13 = vld [vmem:[%s797_s3 + $0x18] sm:$0xff] (!%p190_p9)  ;;  %v472_v15 = vld [vmem:[%s796_s2] ss:$0 sm:$0xff] (!%p190_p9)  ;;  %s213_s12 = sand.u32 (!%p190_p9), 1, %s620_s19   ;;  %s477_s16 = sshll.u32 (!%p190_p9), %s685_s22, 7 }
  0x10   : > { %514 = vmatpush3.bf16.msra.mxu0 (!%p190_p9), %v513_v4  ;;  %v522_v14 = vpack.c.bf16 (!%p190_p9), %v310_v13, %v309_v12  ;;  %s470_s13 = sshll.u32 (!%p190_p9), %s213_s12, 3  ;;  %v474_v20 = vld [vmem:[%s798_s4] ss:$0 sm:$0xff] (!%p190_p9)  ;;  %vm391_vm2 = vcmask (!%p190_p9), 80896   ;;  %s394_s6 = scalar_lea.sflag (!%p190_p9), [#allocation3], %s213_s12 }
  0x11   : > { %515 = vmatprep.subr.bf16.mxu0 (!%p190_p9), %v630_v3  ;;  %520 = vmatpush3.bf16.msra.mxu1 (!%p190_p9), %v519_v9 }
  0x12   : > { %521 = vmatprep.subr.bf16.mxu1 (!%p190_p9), %v630_v3 }
  0x14   : > { %517 = vmatpush3.bf16.msra.mxu0 (!%p190_p9), %v516_v10 }
  0x15   : > { %s217_s17 = scalar_select %p216_p10, %s685_s22, 1  ;;  %523 = vmatpush3.bf16.msra.mxu1 %v522_v14 }
  0x16   : > { %s633_s22 = smov [#allocation2]  }
  0x17   : > { %s471_s23 = sshll.u32 %s217_s17, 3  ;;  %s215_s17 = scalar_lea.vmem [#allocation2], %s470_s13 }
  0x18   : > { %s219_s30 = scalar_lea.vmem %s794_s0, %s471_s23  ;;  %s407_s23 = sshll.u32 %s215_s17, 4  ;;  %s754_s23 = int_to_ptr.vmem [resolvable:$true] %s407_s23 }
  0x19   : > { %v220_v11 = vld [vmem:[%s219_s30] sm:$0xff]  ;;  %s752_s30 = scalar_lea.hbm %s799_s5, %s477_s16  ;;  %s566_s7 = scalar_lea.vmem %s754_s23, 128 }
  0x1a   : > { %499 = vmatmul.mubr.msk.f32.vlgmr.msra.gmra.mrb[0].mxu0 %vm232_vm1, %v220_v11  ;;  %p567_p11 = scmp.ne.s32.totalorder %s754_s23, %s566_s7  ;;  %s570_s8 = sshll.u32 %s633_s22, 4  ;;  %s571_s8 = int_to_ptr.vmem [resolvable:$false] %s570_s8 }
  0x1b   : > { %s572_s9 = scalar_lea.vmem %s571_s8, 256  ;;  %p573_p0 = scmp.lt.s32.totalorder %s754_s23, %s571_s8 }
  0x1c   : > { %p568_p12 = pnand %p567_p11, %p702_p5  ;;  %p574_p1 = scmp.lt.s32.totalorder %s572_s9, %s566_s7 }
  0x1e   : > { %p569_p13 = pneg %p568_p12  ;;  %p575_p2 = por %p574_p1, %p573_p0 }
  0x20   : > { %p576_p3 = pnand %p575_p2, %p569_p13 }
  0xed   : > { %v302_v16 = vpop.f32.mrb[0].mxu0 }
  0xee   : > { %v303_v17 = vadd.f32 %v472_v15, %v302_v16  ;;  %v500_v18 = vpop.f32.mrb[1].mxu0 }
  0xf0   : > { %v306_v19 = vmax.f32 %v303_v17, 0.0 }
  0xf2   : > { %510 = vmatmul.mubr.msk.f32.vlgmr.msra.gmra.mrb[0].mxu1 %vm232_vm1, %v306_v19 }
 0x1c5   : > { %v387_v21 = vpop.f32.mrb[0].mxu1 }
 0x1c6   : > { %v388_v22 = vadd.f32 %v474_v20, %v387_v21  ;;  %v511_v23 = vpop.f32.mrb[1].mxu1 }
 0x1c8   : > { %392 = vst.msk [vmem:[%s215_s17] sm:$0xff] %vm391_vm2, %v388_v22 }
 0x1c9   : > { %579 = shalt.err (!%p576_p3)
}
 0x1ca   : > { %s580_s10 = scalar_lea.hbm %s752_s30, 128  ;;  %s584_s13 = scalar_lea.hbm %s799_s5, 256 }
 0x1cb   : > { %p581_p4 = scmp.ne.s32.totalorder %s752_s30, %s580_s10  ;;  %p585_p9 = scmp.lt.u32.totalorder %s752_s30, %s799_s5 }
 0x1cc   : > { %p586_p10 = scmp.lt.u32.totalorder %s584_s13, %s580_s10  ;;  %p588_p12 = scmp.lt.u32.totalorder %s580_s10, %s752_s30 }
 0x1cd   : > { %p582_p7 = pnand %p581_p4, %p702_p5 }
 0x1ce   : > { %p587_p11 = por %p586_p10, %p585_p9 }
 0x1cf   : > { %p583_p8 = pneg %p582_p7 }
 0x1d0   : > { %p589_p13 = por %p588_p12, %p587_p11 }
 0x1d2   : > { %p590_p0 = pnand %p589_p13, %p583_p8 }
 0x1d4   : > { %593 = shalt.err (!%p590_p0)
}
 0x1d5   : > { %524 = dma.vmem_to_hbm [thread:$0]  (%p702_p5), %s754_s23, 128, %s752_s30, %s394_s6  }
 0x1d6 PF: > { %p530_p1 = scmp.ge.s32.totalorder %s628_s21, 2  ;;  %s419_s16 = sand.u32 1, %s616_s18  }
 0x1d7   : > { %s420_s17 = scalar_lea.sflag [#allocation3], %s419_s16 }
 0x1d8   : > { %p527_p2 = pnand %p530_p1, %p706_p6 }
 0x1da   : > { %611 = dma.done.wait (!%p527_p2), %s420_s17, 128  }
 0x1db   : > { %613 = vsyncadd (!%p527_p2), %s420_s17, 4294967168  ;;  %p15_p3 = scmp.ge.s32.totalorder %s689_s24, 4   ;;  %s802_s18 = smov %s620_s19 }
 0x1dc   : > { %s803_s19 = smov %s624_s20  ;;  %s804_s20 = smov %s700_s27 }
 0x1dd   : > { %s805_s21 = smov %s689_s24  ;;  %17 = sbr.rel (!%p15_p3) target bundleno = 3 (0x3), region = 75 }
 0x1e4   :  { %425 = vsyncpa [#allocation3], 1 }
 0x1e5   :  { %427 = vsyncpa [#allocation3 + $0x1], 1 }

</bundles_post_ra>
